<compile_context>
chip_gen: v6e
topology: v6e:2x2x1
jax: 0.10.0
libtpu: 0.0.40
codegen_flags: <defaults>
</compile_context>

<pallas_src>
import functools

import jax
import jax.numpy as jnp
from jax.experimental import pallas as pl
from jax.experimental.pallas import tpu as pltpu

LANE = 128
SUBLANE = 8


def _rmse_partial_kernel(yhat_ref, y_ref, out_ref, acc_ref, *,
                         row_tile, n_rows, blocks_per_core, n_blocks,
                         needs_row_mask, guard_overrun):
    """Per-core partial sum of squared differences.

    yhat_ref, y_ref : (row_tile, 128) VMEM tiles (original input dtype)
    out_ref         : (1, 1) SMEM f32 — this core's partial sum
    acc_ref         : (8, 128) VMEM f32 vreg-sized vector accumulator
    """
    p = pl.program_id(0)          # parallel (per-core) axis
    i = pl.program_id(1)          # sequential reduction axis
    g = p * blocks_per_core + i   # global row-block index

    @pl.when(i == 0)
    def _init():
        acc_ref[...] = jnp.zeros_like(acc_ref)

    d = yhat_ref[...].astype(jnp.float32) - y_ref[...].astype(jnp.float32)
    dd = d * d

    def _fold_into_acc(x):
        # (row_tile, 128) -> (row_tile//8, 8, 128): pure sublane re-tiling,
        # then a VPU tree-add down to one (8, 128) vreg block.
        acc_ref[...] += jnp.sum(
            x.reshape(row_tile // SUBLANE, SUBLANE, LANE), axis=0)

    if needs_row_mask:
        last = n_blocks - 1

        @pl.when(g < last)
        def _full_block():
            _fold_into_acc(dd)

        @pl.when(g == last)
        def _tail_block():
            # Only the globally-last row block can be partial; rows past the
            # true extent contain garbage, so zero them.  (Within-row lane
            # tail, if any, was zero-padded in the wrapper: contributes 0.)
            row_ids = jax.lax.broadcasted_iota(jnp.int32, dd.shape, 0)
            valid_rows = n_rows - last * row_tile
            _fold_into_acc(jnp.where(row_ids < valid_rows, dd,
                                     jnp.float32(0.0)))
    elif guard_overrun:
        # Uneven split across cores: padded trailing steps contribute nothing.
        @pl.when(g < n_blocks)
        def _guarded():
            _fold_into_acc(dd)
    else:
        _fold_into_acc(dd)

    @pl.when(i == blocks_per_core - 1)
    def _finalize():
        out_ref[0, 0] = jnp.sum(acc_ref[...])


def rmse_loss(yhat, y, eps=1e-6, max_row_tile=8192):
    """RMSE loss: sqrt(MSE(yhat, y) + eps). Returns a float32 scalar."""
    assert yhat.shape == y.shape, "yhat and y must have the same shape"
    assert max_row_tile % SUBLANE == 0
    n = int(yhat.size)
    assert n > 0, "inputs must be non-empty"

    yhat_flat = yhat.reshape(-1)
    y_flat = y.reshape(-1)

    rows = (n + LANE - 1) // LANE

    if rows <= max_row_tile:
        # Single row block: round up to a sublane multiple so the in-kernel
        # sublane fold works; padded rows are zero and contribute 0.
        row_tile = ((rows + SUBLANE - 1) // SUBLANE) * SUBLANE
        rows_view = row_tile
    else:
        row_tile = max_row_tile
        rows_view = rows

    n_view = rows_view * LANE
    if n_view != n:
        # Rare path (n not a multiple of 128, or tiny input rounded up to a
        # sublane multiple): zero-pad — padded slots contribute 0 to the sum
        # of squared diffs; we still divide by the true n.
        # TODO(synk): for very large inputs with n % 128 != 0 this pad is an
        # extra HBM pass; an in-kernel lane mask on a 1-D view would avoid it.
        yhat_flat = jnp.pad(yhat_flat, (0, n_view - n))
        y_flat = jnp.pad(y_flat, (0, n_view - n))
    yhat2d = yhat_flat.reshape(rows_view, LANE)
    y2d = y_flat.reshape(rows_view, LANE)

    n_blocks = (rows_view + row_tile - 1) // row_tile
    needs_row_mask = (rows_view % row_tile) != 0

    # Leading parallel axis: 2-way split of the row blocks (per-core partial
    # sums).  Uses both TensorCores on v7x; harmless elsewhere.
    n_cores = 2 if n_blocks >= 2 else 1
    blocks_per_core = (n_blocks + n_cores - 1) // n_cores
    guard_overrun = (n_cores * blocks_per_core) > n_blocks

    def in_index_map(p, i):
        g = p * blocks_per_core + i
        # Clamp: overrun steps re-fetch the last valid block (skipped in-kernel).
        return (jnp.minimum(g, n_blocks - 1), 0)

    kernel = functools.partial(
        _rmse_partial_kernel,
        row_tile=row_tile,
        n_rows=rows_view,
        blocks_per_core=blocks_per_core,
        n_blocks=n_blocks,
        needs_row_mask=needs_row_mask,
        guard_overrun=guard_overrun,
    )

    # Explicit scoped-VMEM budget: 2 inputs x 2 pipeline buffers per block,
    # plus slack for the (8,128) accumulator / bookkeeping.
    in_itemsize = (jnp.dtype(yhat.dtype).itemsize
                   + jnp.dtype(y.dtype).itemsize)
    pipeline_bytes = 2 * row_tile * LANE * in_itemsize
    vmem_limit = int(min(max(pipeline_bytes + (4 << 20), 16 << 20), 48 << 20))

    partial_sums = pl.pallas_call(
        kernel,
        out_shape=jax.ShapeDtypeStruct((n_cores, 1), jnp.float32),
        grid_spec=pltpu.PrefetchScalarGridSpec(
            num_scalar_prefetch=0,
            grid=(n_cores, blocks_per_core),
            in_specs=[
                pl.BlockSpec((row_tile, LANE), in_index_map),
                pl.BlockSpec((row_tile, LANE), in_index_map),
            ],
            out_specs=pl.BlockSpec(
                (1, 1), lambda p, i: (p, 0),
                memory_space=pltpu.MemorySpace.SMEM,
            ),
            scratch_shapes=[pltpu.VMEM((SUBLANE, LANE), jnp.float32)],
        ),
        compiler_params=pltpu.CompilerParams(
            dimension_semantics=("parallel", "arbitrary"),
            vmem_limit_bytes=vmem_limit),
    )(yhat2d, y2d)

    total = jnp.sum(partial_sums)
    return jnp.sqrt(total / jnp.float32(n) + jnp.float32(eps))


def _ref_rmse(yhat, y, eps=1e-6):
    d = yhat.astype(jnp.float32) - y.astype(jnp.float32)
    return jnp.sqrt(jnp.mean(d * d) + jnp.float32(eps))


if __name__ == "__main__":
    key = jax.random.PRNGKey(0)
    k1, k2, k3, k4, k5, k6 = jax.random.split(key, 6)

    # 1) Small NCHW-shaped f32 inputs consistent with a RainNet prediction map
    #    (single-block path).
    shape = (2, 4, 16, 16)
    yhat = jax.random.normal(k1, shape, dtype=jnp.float32)
    y = jax.random.normal(k2, shape, dtype=jnp.float32)
    loss = rmse_loss(yhat, y)
    jax.block_until_ready(loss)
    ref = _ref_rmse(yhat, y)
    assert jnp.allclose(loss, ref, rtol=1e-5, atol=1e-6), (loss, ref)

    # 2) Awkward shape (n not a multiple of 128, rows not a multiple of the
    #    tile) with a tiny tile override: exercises the multi-block path with
    #    the 2-way parallel split, uneven split, and the masked tail block.
    shape2 = (1, 3, 30, 31)
    yhat2 = jax.random.normal(k3, shape2, dtype=jnp.float32)
    y2 = jax.random.normal(k4, shape2, dtype=jnp.float32)
    loss2 = rmse_loss(yhat2, y2, max_row_tile=8)
    jax.block_until_ready(loss2)
    ref2 = _ref_rmse(yhat2, y2)
    assert jnp.allclose(loss2, ref2, rtol=1e-5, atol=1e-6), (loss2, ref2)

    # 3) bf16 inputs: kept bf16 into the kernel, upcast per-tile.
    yhat3 = jax.random.normal(k5, shape, dtype=jnp.bfloat16)
    y3 = jax.random.normal(k6, shape, dtype=jnp.bfloat16)
    loss3 = rmse_loss(yhat3, y3)
    jax.block_until_ready(loss3)
    ref3 = _ref_rmse(yhat3, y3)
    assert jnp.allclose(loss3, ref3, rtol=1e-5, atol=1e-6), (loss3, ref3)

    # 4) Even 2-way split, no masking (multi-block path without tail).
    loss4 = rmse_loss(yhat, y, max_row_tile=8)
    jax.block_until_ready(loss4)
    assert jnp.allclose(loss4, ref, rtol=1e-5, atol=1e-6), (loss4, ref)

    print("KERNEL_OK")
</pallas_src>

<mosaic_0001>
module attributes {stable_mosaic.version = 11 : i64} {
  func.func @_rmse_partial_kernel(%arg0: i32, %arg1: i32, %arg2: memref<16x128xf32, #tpu.memory_space<vmem>>, %arg3: memref<16x128xf32, #tpu.memory_space<vmem>>, %arg4: memref<1x1xf32, #tpu.memory_space<smem>>, %arg5: memref<8x128xf32, #tpu.memory_space<vmem>>) attributes {dimension_semantics = [#tpu.dimension_semantics<parallel>, #tpu.dimension_semantics<arbitrary>], iteration_bounds = array<i64: 1, 1>, scalar_prefetch = 0 : i64, scratch_operands = 1 : i64, tpu.core_type = #tpu.core_type<tc>, window_params = [{transform_indices = @transform_0, window_bounds = array<i64: 16, 128>}, {transform_indices = @transform_1, window_bounds = array<i64: 16, 128>}, {transform_indices = @transform_2, window_bounds = array<i64: 1, 1>}]} {
    %c0_i32 = arith.constant 0 : i32
    %0 = arith.cmpi eq, %arg1, %c0_i32 : i32
    %1 = arith.extui %0 : i1 to i32
    %c0_i32_0 = arith.constant 0 : i32
    %2 = arith.cmpi ne, %1, %c0_i32_0 : i32
    scf.if %2 {
      %cst_10 = arith.constant 0.000000e+00 : f32
      %15 = vector.broadcast %cst_10 : f32 to vector<8x128xf32>
      %c0_11 = arith.constant 0 : index
      %c0_12 = arith.constant 0 : index
      %16 = vector.load %arg5[%c0_11, %c0_12] : memref<8x128xf32, #tpu.memory_space<vmem>>, vector<8x128xf32>
      tpu.vector_store %arg5[%c0_11, %c0_12], %15 {strides = array<i32>} : memref<8x128xf32, #tpu.memory_space<vmem>>, vector<8x128xf32>,
    } else {
    }
    %c0 = arith.constant 0 : index
    %c0_1 = arith.constant 0 : index
    %3 = vector.load %arg2[%c0, %c0_1] : memref<16x128xf32, #tpu.memory_space<vmem>>, vector<16x128xf32>
    %c0_2 = arith.constant 0 : index
    %c0_3 = arith.constant 0 : index
    %4 = vector.load %arg3[%c0_2, %c0_3] : memref<16x128xf32, #tpu.memory_space<vmem>>, vector<16x128xf32>
    %5 = arith.subf %3, %4 : vector<16x128xf32>
    %6 = arith.mulf %5, %5 : vector<16x128xf32>
    %c0_4 = arith.constant 0 : index
    %c0_5 = arith.constant 0 : index
    %7 = vector.load %arg5[%c0_4, %c0_5] : memref<8x128xf32, #tpu.memory_space<vmem>>, vector<8x128xf32>
    %8 = vector.shape_cast %6 : vector<16x128xf32> to vector<2x8x128xf32>
    %cst = arith.constant dense<0.000000e+00> : vector<8x128xf32>
    %9 = vector.multi_reduction <add>, %8, %cst [0] : vector<2x8x128xf32> to vector<8x128xf32>
    %10 = arith.addf %7, %9 : vector<8x128xf32>
    %c0_6 = arith.constant 0 : index
    %c0_7 = arith.constant 0 : index
    %11 = vector.load %arg5[%c0_6, %c0_7] : memref<8x128xf32, #tpu.memory_space<vmem>>, vector<8x128xf32>
    tpu.vector_store %arg5[%c0_6, %c0_7], %10 {strides = array<i32>} : memref<8x128xf32, #tpu.memory_space<vmem>>, vector<8x128xf32>,
    %c0_i32_8 = arith.constant 0 : i32
    %12 = arith.cmpi eq, %arg1, %c0_i32_8 : i32
    %13 = arith.extui %12 : i1 to i32
    %c0_i32_9 = arith.constant 0 : i32
    %14 = arith.cmpi ne, %13, %c0_i32_9 : i32
    scf.if %14 {
      %c0_10 = arith.constant 0 : index
      %c0_11 = arith.constant 0 : index
      %15 = vector.load %arg5[%c0_10, %c0_11] : memref<8x128xf32, #tpu.memory_space<vmem>>, vector<8x128xf32>
      %16 = vector.shape_cast %15 : vector<8x128xf32> to vector<1x8x128xf32>
      %cst_12 = arith.constant dense<0.000000e+00> : vector<1xf32>
      %17 = vector.multi_reduction <add>, %16, %cst_12 [1, 2] : vector<1x8x128xf32> to vector<1xf32>
      %18 = vector.shape_cast %17 : vector<1xf32> to vector<1x1x1xf32>
      %19 = vector.extract %18[0, 0, 0] : f32 from vector<1x1x1xf32>
      %c0_13 = arith.constant 0 : index
      %c0_14 = arith.constant 0 : index
      %20 = memref.load %arg4[%c0_13, %c0_14] : memref<1x1xf32, #tpu.memory_space<smem>>
      memref.store %19, %arg4[%c0_13, %c0_14] : memref<1x1xf32, #tpu.memory_space<smem>>
    } else {
    }
    return
  }
  func.func @transform_0(%arg0: i32, %arg1: i32) -> (i32, i32) {
    %c1_i32 = arith.constant 1 : i32
    %0 = arith.muli %arg0, %c1_i32 : i32
    %1 = arith.addi %0, %arg1 : i32
    %c0_i32 = arith.constant 0 : i32
    %2 = arith.minsi %1, %c0_i32 : i32
    %c0_i32_0 = arith.constant 0 : i32
    %c0_i32_1 = arith.constant 0 : i32
    return %2, %c0_i32_0 : i32, i32
  }
  func.func @transform_1(%arg0: i32, %arg1: i32) -> (i32, i32) {
    %c1_i32 = arith.constant 1 : i32
    %0 = arith.muli %arg0, %c1_i32 : i32
    %1 = arith.addi %0, %arg1 : i32
    %c0_i32 = arith.constant 0 : i32
    %2 = arith.minsi %1, %c0_i32 : i32
    %c0_i32_0 = arith.constant 0 : i32
    %c0_i32_1 = arith.constant 0 : i32
    return %2, %c0_i32_0 : i32, i32
  }
  func.func @transform_2(%arg0: i32, %arg1: i32) -> (i32, i32) {
    %c0_i32 = arith.constant 0 : i32
    %c0_i32_0 = arith.constant 0 : i32
    return %arg0, %c0_i32 : i32, i32
  }
}

</mosaic_0001>

<bundles_post_ra>
// kernel: tpu_custom_call.1
= control target key start
LH: loop header
LB: loop body
LE: loop exit
PB: predicated region body
PF: predicated region fallthrough
CT: control target
= control target key end

     0   :  { %7 = vsyncpa [#allocation4], 0  ;;  %s201_s0 = inlined_call_operand.hbm [shape: f32[16,128], index: 0, kind: input, shape index: {}]   ;;  %s202_s1 = inlined_call_operand.hbm [shape: f32[16,128], index: 1, kind: input, shape index: {}]   ;;  %s203_s2 = inlined_call_operand.hbm [shape: f32[1,1], index: 2, kind: output, shape index: {}]  }
   0x1   :  { %8 = vsyncpa [#allocation7], 0 }
   0x2   :  { %9 = vsyncpa [#allocation5], 0  ;;  %s172_s9 = smov [#allocation3]  }
   0x3   :  { %s21_s10 = sshll.u32 %s172_s9, 4  ;;  %s22_s10 = int_to_ptr.vmem [resolvable:$true] %s21_s10 }
   0x4   :  { %s126_s11 = scalar_lea.vmem %s22_s10, 256  ;;  %p131_p1 = scmp.lt.s32.totalorder %s22_s10, %s22_s10 }
   0x5   :  { %p127_p0 = scmp.ne.s32.totalorder %s22_s10, %s126_s11  ;;  %p132_p2 = scmp.lt.s32.totalorder %s126_s11, %s126_s11 }
   0x7   :  { %p133_p3 = por %p132_p2, %p131_p1 }
   0x9   :  { %p134_p4 = pnand %p133_p3, %p127_p0 }
   0xb   :  { %137 = shalt.err (!%p134_p4)
}
   0xc   :  { %s173_s12 = smov 128   ;;  %s174_s13 = smov 8  }
   0xd   :  { %27 = dma.hbm_to_vmem [thread:$0]  %s201_s0, 256, %s22_s10, [#allocation4], %s173_s12, %s173_s12, %s174_s13  }
   0xe   :  { %s175_s16 = smov [#allocation6]  }
   0xf   :  { %s39_s17 = sshll.u32 %s175_s16, 4  ;;  %s40_s17 = int_to_ptr.vmem [resolvable:$true] %s39_s17 }
  0x10   :  { %s146_s18 = scalar_lea.vmem %s40_s17, 256  ;;  %p151_p6 = scmp.lt.s32.totalorder %s40_s17, %s40_s17 }
  0x11   :  { %p147_p5 = scmp.ne.s32.totalorder %s40_s17, %s146_s18  ;;  %p152_p7 = scmp.lt.s32.totalorder %s146_s18, %s146_s18 }
  0x13   :  { %p153_p8 = por %p152_p7, %p151_p6 }
  0x15   :  { %p154_p9 = pnand %p153_p8, %p147_p5 }
  0x17   :  { %157 = shalt.err (!%p154_p9)
}
  0x18   :  { %45 = dma.hbm_to_vmem [thread:$0]  %s202_s1, 256, %s40_s17, [#allocation7], %s173_s12, %s173_s12, %s174_s13  }
  0x19   :  { %166 = dma.done.wait [#allocation4], 256  }
  0x1a   :  { %167 = vsyncadd [#allocation4], 4294967040 }
  0x1b   :  { %168 = dma.done.wait [#allocation7], 256  }
  0x1c   :  { %169 = vsyncadd [#allocation7], 4294967040  ;;  %v65_v0 = vld [vmem:[#allocation3] sm:$0xff]  ;;  %v66_v1 = vld [vmem:[#allocation3 + $0x8] sm:$0xff]  ;;  %s176_s1 = smov [#allocation8]  }
  0x1d   :  { %v67_v2 = vld [vmem:[#allocation6] sm:$0xff]  ;;  %v68_v3 = vld [vmem:[#allocation6 + $0x8] sm:$0xff] }
  0x1e   :  { %v69_v4 = vsub.f32 %v65_v0, %v67_v2  ;;  %v70_v5 = vsub.f32 %v66_v1, %v68_v3 }
  0x20   :  { %v71_v6 = vmul.f32 %v69_v4, %v69_v4  ;;  %v72_v7 = vmul.f32 %v70_v5, %v70_v5 }
  0x22   :  { %v74_v8 = vadd.f32 %v72_v7, %v71_v6 }
  0x24   :  { %81 = vadd.xlane.f32.xlu0 %v74_v8 }
  0xad   :  { %v82_v9 = vpop.xlane.xlu0 %81 }
  0xae   :  { %v83_v10 = vrot.slane %v82_v9, 4 }
  0xb0   :  { %v84_v11 = vadd.f32 %v83_v10, %v82_v9 }
  0xb2   :  { %v85_v12 = vrot.slane %v84_v11, 2 }
  0xb4   :  { %v86_v13 = vadd.f32 %v85_v12, %v84_v11 }
  0xb6   :  { %v87_v14 = vrot.slane %v86_v13, 1 }
  0xb8   :  { %v88_v15 = vadd.f32 %v87_v14, %v86_v13 }
  0xba   :  { %111 = vpush %v88_v15 }
  0xeb   :  { %s112_s0 = spop %111 }
  0xec   :  { %91 = sst [smem:[#allocation8]] %s112_s0 }
  0xed   :  { %99 = dma.smem_to_hbm %s176_s1, 16, %s203_s2, [#allocation5]  }
  0xee   :  { %170 = dma.done.wait [#allocation5], 16  }
  0xef   :  { %171 = vsyncadd [#allocation5], 4294967280 }
  0xf0   :  { %103 = sfence }
  0xf1   :  { %104 = vsyncpa [#allocation4], 1 }
  0xf2   :  { %105 = vsyncpa [#allocation7], 1 }
  0xf3   :  { %106 = vsyncpa [#allocation5], 1 }

</bundles_post_ra>
